<compile_context>
chip_gen: v6e
topology: v6e:2x2x1
jax: 0.10.0
libtpu: 0.0.40
codegen_flags: <defaults>
</compile_context>

<pallas_src>
import functools

import jax
import jax.numpy as jnp
from jax.experimental import pallas as pl
from jax.experimental.pallas import tpu as pltpu

LANE = 128
SUBLANE = 8


def _round_up(x, m):
    return (x + m - 1) // m * m


# ----------------------------- Pallas kernel --------------------------------

def _gnn_fused_kernel(*refs, n_layers):
    """Fused GCN forward: all GCN layers + output head in one invocation.

    refs layout:
      a_ref                [Np, Np]          bf16  normalized adjacency (zero-padded)
      x_ref                [Np, in_pad]      bf16  node features (zero-padded)
      (w_l, b_l) * L       W_l bf16 [in_l_pad, out_l_pad] (pre-transposed);
                           b_l f32 [1, out_l_pad]
      wo_ref, bo_ref       output head, pre-transposed bf16 / f32 bias
      o_ref                [Np, out_pad]     f32   output (real values in [:N, :output_dim])
    """
    a_ref, x_ref = refs[0], refs[1]
    wo_ref, bo_ref = refs[2 + 2 * n_layers], refs[3 + 2 * n_layers]
    o_ref = refs[4 + 2 * n_layers]

    a = a_ref[...]          # bf16
    h = x_ref[...]          # bf16 activations; accumulation is f32 via MXU

    # Small static layer count -> unrolled Python loop.
    # TODO(synk): beyond ~4 layers, stack the [hid,hid] hidden layers and use
    # lax.fori_loop with dynamic w_ref[l] indexing to bound code size / vreg ranges.
    for l in range(n_layers):
        w_ref = refs[2 + 2 * l]
        b_ref = refs[3 + 2 * l]
        # X @ W  (weights already [in, out]: lane-aligned contraction, no relayout).
        xw = jnp.dot(h, w_ref[...], preferred_element_type=jnp.float32)
        # A_hat @ (XW); f32 epilogue (bias + ReLU), single bf16 pack per layer.
        agg = jnp.dot(a, xw.astype(jnp.bfloat16),
                      preferred_element_type=jnp.float32)
        h = jnp.maximum(agg + b_ref[...], 0.0).astype(jnp.bfloat16)
        # dropout between layers is identity at inference -> no op emitted.

    out = jnp.dot(h, wo_ref[...], preferred_element_type=jnp.float32) + bo_ref[...]
    o_ref[...] = out.astype(o_ref.dtype)


def gnn_forward_fused(a_pad, x_pad, layer_params, w_out, b_out):
    """layer_params: tuple of (W_l [in_pad, out_pad] bf16, b_l [1, out_pad] f32)."""
    n_layers = len(layer_params)
    n_pad = a_pad.shape[0]
    out_pad = w_out.shape[1]

    operands = [a_pad, x_pad]
    for (w, b) in layer_params:
        operands += [w, b]
    operands += [w_out, b_out]

    # Scoped-VMEM limit sized to the actual resident footprint (+2x headroom for
    # intermediates), so moderate graph sizes don't hit the 16/32 MiB defaults.
    total_bytes = sum(int(o.size) * o.dtype.itemsize for o in operands)
    total_bytes += n_pad * out_pad * 4  # output
    vmem_limit = int(min(2 * total_bytes + (16 << 20), 128 << 20))

    vmem = pl.BlockSpec(memory_space=pltpu.MemorySpace.VMEM)
    return pl.pallas_call(
        functools.partial(_gnn_fused_kernel, n_layers=n_layers),
        out_shape=jax.ShapeDtypeStruct((n_pad, out_pad), jnp.float32),
        in_specs=[vmem] * len(operands),
        out_specs=vmem,
        compiler_params=pltpu.CompilerParams(vmem_limit_bytes=vmem_limit),
    )(*operands)


# ------------------------------ JAX glue code --------------------------------

def normalized_adjacency_padded(edge_index, num_nodes, n_pad):
    """Dense A_hat = D^{-1/2}(A + I)D^{-1/2}, zero-padded to [n_pad, n_pad], bf16.

    A[dst, src] accumulates edge multiplicity (matches PyG GCNConv with
    duplicate edges). bf16 A_hat -> ~bf16-rounding difference vs f32 reference."""
    src, dst = edge_index[0], edge_index[1]
    adj = jnp.zeros((num_nodes, num_nodes), jnp.float32)
    adj = adj.at[dst, src].add(1.0)
    adj = adj + jnp.eye(num_nodes, dtype=jnp.float32)        # self loops
    deg = adj.sum(axis=1)
    d_inv_sqrt = jnp.where(deg > 0, 1.0 / jnp.sqrt(deg), 0.0)
    a_hat = adj * d_inv_sqrt[:, None] * d_inv_sqrt[None, :]
    a_pad = jnp.zeros((n_pad, n_pad), jnp.float32)
    a_pad = a_pad.at[:num_nodes, :num_nodes].set(a_hat)
    return a_pad.astype(jnp.bfloat16)


def init_params(key, node_feature_dim, gnn_hidden_dim, output_dim, gnn_layers):
    """PyTorch-style parameters: weights stored [out_features, in_features]."""
    params = {"convs": [], "out": None}
    in_dim = node_feature_dim
    for _ in range(gnn_layers):
        key, kw, kb = jax.random.split(key, 3)
        w = 0.1 * jax.random.normal(kw, (gnn_hidden_dim, in_dim), jnp.float32)
        b = 0.1 * jax.random.normal(kb, (gnn_hidden_dim,), jnp.float32)
        params["convs"].append((w, b))
        in_dim = gnn_hidden_dim
    key, kw, kb = jax.random.split(key, 3)
    w_out = 0.1 * jax.random.normal(kw, (output_dim, gnn_hidden_dim), jnp.float32)
    b_out = 0.1 * jax.random.normal(kb, (output_dim,), jnp.float32)
    params["out"] = (w_out, b_out)
    return params


def _pad_weight_t(w, in_pad, out_pad):
    """torch [out, in] -> pre-transposed, zero-padded [in_pad, out_pad], bf16."""
    wt = w.T  # [in, out]
    buf = jnp.zeros((in_pad, out_pad), jnp.float32)
    return buf.at[:wt.shape[0], :wt.shape[1]].set(wt).astype(jnp.bfloat16)


def _pad_bias(b, out_pad):
    return jnp.zeros((1, out_pad), jnp.float32).at[0, :b.shape[0]].set(b)


def prepare_inference_state(params, edge_index, num_nodes):
    """One-time prep: cached A_hat + per-layer lane-dense, pre-transposed weights."""
    in_dim = params["convs"][0][0].shape[1]
    hidden_dim = params["convs"][0][0].shape[0]
    output_dim = params["out"][0].shape[0]

    # Per-matrix padding: each dim rounded to 128 independently (no square cube).
    in_pad = _round_up(in_dim, LANE)
    hid_pad = _round_up(hidden_dim, LANE)
    out_pad = _round_up(output_dim, LANE)
    n_pad = _round_up(max(num_nodes, SUBLANE), LANE)

    a_pad = normalized_adjacency_padded(edge_index, num_nodes, n_pad)

    layer_params = []
    cur_in_pad = in_pad
    for (w, b) in params["convs"]:
        layer_params.append((_pad_weight_t(w, cur_in_pad, hid_pad),
                             _pad_bias(b, hid_pad)))
        cur_in_pad = hid_pad
    layer_params = tuple(layer_params)

    w_out = _pad_weight_t(params["out"][0], hid_pad, out_pad)
    b_out = _pad_bias(params["out"][1], out_pad)

    return {
        "a_pad": a_pad, "layer_params": layer_params,
        "w_out": w_out, "b_out": b_out,
        "num_nodes": num_nodes, "in_dim": in_dim, "output_dim": output_dim,
        "n_pad": n_pad, "in_pad": in_pad,
    }


@functools.partial(jax.jit, static_argnames=("num_nodes", "in_dim", "output_dim",
                                             "n_pad", "in_pad"))
def _apply_jit(a_pad, layer_params, w_out, b_out, x_node, *,
               num_nodes, in_dim, output_dim, n_pad, in_pad):
    # Single cheap pad on bf16 (was zeros + at[].set on f32 -> halves DMA bytes).
    x_pad = jnp.pad(x_node.astype(jnp.bfloat16),
                    ((0, n_pad - num_nodes), (0, in_pad - in_dim)))
    out_full = gnn_forward_fused(a_pad, x_pad, layer_params, w_out, b_out)
    return out_full[:num_nodes, :output_dim]


def gnn_apply(state, x_node):
    """Forward pass of GNNModel (GCN variant, eval mode)."""
    return _apply_jit(
        state["a_pad"], state["layer_params"], state["w_out"], state["b_out"],
        x_node,
        num_nodes=state["num_nodes"], in_dim=state["in_dim"],
        output_dim=state["output_dim"], n_pad=state["n_pad"],
        in_pad=state["in_pad"])


# ---------------------------- pure-JAX reference -----------------------------

def gnn_reference(params, edge_index, num_nodes, x_node):
    src, dst = edge_index[0], edge_index[1]
    adj = jnp.zeros((num_nodes, num_nodes), jnp.float32).at[dst, src].add(1.0)
    adj = adj + jnp.eye(num_nodes, dtype=jnp.float32)
    deg = adj.sum(axis=1)
    dis = jnp.where(deg > 0, 1.0 / jnp.sqrt(deg), 0.0)
    a_hat = adj * dis[:, None] * dis[None, :]
    h = x_node
    for (w, b) in params["convs"]:
        h = jax.nn.relu(a_hat @ (h @ w.T) + b[None, :])
    w_out, b_out = params["out"]
    return h @ w_out.T + b_out[None, :]


# --------------------------------- driver -----------------------------------

if __name__ == "__main__":
    node_feature_dim = 16
    gnn_hidden_dim = 32
    output_dim = 8
    gnn_layers = 2
    num_nodes = 16
    num_edges = 40

    key = jax.random.PRNGKey(0)
    k_feat, k_edge, k_param = jax.random.split(key, 3)

    x_node = jax.random.normal(k_feat, (num_nodes, node_feature_dim), jnp.float32)
    edge_index = jax.random.randint(k_edge, (2, num_edges), 0, num_nodes, jnp.int32)

    params = init_params(k_param, node_feature_dim, gnn_hidden_dim,
                         output_dim, gnn_layers)

    # A_hat + padded/pre-transposed weights computed ONCE, off the hot path.
    state = prepare_inference_state(params, edge_index, num_nodes)

    out = gnn_apply(state, x_node)
    out = jax.block_until_ready(out)
    assert out.shape == (num_nodes, output_dim), out.shape

    # Sanity check against a pure-JAX f32 reference (bf16 matmul rounding tolerance).
    ref = jax.block_until_ready(gnn_reference(params, edge_index, num_nodes, x_node))
    max_err = float(jnp.max(jnp.abs(out - ref)))
    scale = float(1.0 + jnp.max(jnp.abs(ref)))
    assert max_err < 5e-2 * scale, (max_err, scale)

    print("KERNEL_OK")
</pallas_src>

<mosaic_0001>
module attributes {stable_mosaic.version = 11 : i64} {
  func.func @_gnn_fused_kernel(%arg0: memref<128x128xbf16, #tpu.memory_space<vmem>>, %arg1: memref<128x128xbf16, #tpu.memory_space<vmem>>, %arg2: memref<128x128xbf16, #tpu.memory_space<vmem>>, %arg3: memref<1x128xf32, #tpu.memory_space<vmem>>, %arg4: memref<128x128xbf16, #tpu.memory_space<vmem>>, %arg5: memref<1x128xf32, #tpu.memory_space<vmem>>, %arg6: memref<128x128xbf16, #tpu.memory_space<vmem>>, %arg7: memref<1x128xf32, #tpu.memory_space<vmem>>, %arg8: memref<128x128xf32, #tpu.memory_space<vmem>>) attributes {dimension_semantics = [], scalar_prefetch = 0 : i64, scratch_operands = 0 : i64, tpu.core_type = #tpu.core_type<tc>} {
    %c0 = arith.constant 0 : index
    %c0_0 = arith.constant 0 : index
    %0 = vector.load %arg0[%c0, %c0_0] : memref<128x128xbf16, #tpu.memory_space<vmem>>, vector<128x128xbf16>
    %c0_1 = arith.constant 0 : index
    %c0_2 = arith.constant 0 : index
    %1 = vector.load %arg1[%c0_1, %c0_2] : memref<128x128xbf16, #tpu.memory_space<vmem>>, vector<128x128xbf16>
    %c0_3 = arith.constant 0 : index
    %c0_4 = arith.constant 0 : index
    %2 = vector.load %arg2[%c0_3, %c0_4] : memref<128x128xbf16, #tpu.memory_space<vmem>>, vector<128x128xbf16>
    %cst = arith.constant dense<0.000000e+00> : vector<128x128xf32>
    %3 = tpu.matmul %1, %2, %cst {dimension_numbers = #tpu.dot_dimension_numbers<[1], [0], [0], [1], [0, 0, 1, 1], [], []>} : vector<128x128xbf16>, vector<128x128xbf16>, vector<128x128xf32> -> vector<128x128xf32>
    %4 = arith.truncf %3 : vector<128x128xf32> to vector<128x128xbf16>
    %cst_5 = arith.constant dense<0.000000e+00> : vector<128x128xf32>
    %5 = tpu.matmul %0, %4, %cst_5 {dimension_numbers = #tpu.dot_dimension_numbers<[1], [0], [0], [1], [0, 0, 1, 1], [], []>} : vector<128x128xbf16>, vector<128x128xbf16>, vector<128x128xf32> -> vector<128x128xf32>
    %c0_6 = arith.constant 0 : index
    %c0_7 = arith.constant 0 : index
    %6 = vector.load %arg3[%c0_6, %c0_7] : memref<1x128xf32, #tpu.memory_space<vmem>>, vector<1x128xf32>
    %7 = vector.broadcast %6 : vector<1x128xf32> to vector<128x128xf32>
    %8 = arith.addf %5, %7 : vector<128x128xf32>
    %cst_8 = arith.constant 0.000000e+00 : f32
    %9 = vector.broadcast %cst_8 : f32 to vector<128x128xf32>
    %10 = arith.maximumf %8, %9 : vector<128x128xf32>
    %11 = arith.truncf %10 : vector<128x128xf32> to vector<128x128xbf16>
    %c0_9 = arith.constant 0 : index
    %c0_10 = arith.constant 0 : index
    %12 = vector.load %arg4[%c0_9, %c0_10] : memref<128x128xbf16, #tpu.memory_space<vmem>>, vector<128x128xbf16>
    %cst_11 = arith.constant dense<0.000000e+00> : vector<128x128xf32>
    %13 = tpu.matmul %11, %12, %cst_11 {dimension_numbers = #tpu.dot_dimension_numbers<[1], [0], [0], [1], [0, 0, 1, 1], [], []>} : vector<128x128xbf16>, vector<128x128xbf16>, vector<128x128xf32> -> vector<128x128xf32>
    %14 = arith.truncf %13 : vector<128x128xf32> to vector<128x128xbf16>
    %cst_12 = arith.constant dense<0.000000e+00> : vector<128x128xf32>
    %15 = tpu.matmul %0, %14, %cst_12 {dimension_numbers = #tpu.dot_dimension_numbers<[1], [0], [0], [1], [0, 0, 1, 1], [], []>} : vector<128x128xbf16>, vector<128x128xbf16>, vector<128x128xf32> -> vector<128x128xf32>
    %c0_13 = arith.constant 0 : index
    %c0_14 = arith.constant 0 : index
    %16 = vector.load %arg5[%c0_13, %c0_14] : memref<1x128xf32, #tpu.memory_space<vmem>>, vector<1x128xf32>
    %17 = vector.broadcast %16 : vector<1x128xf32> to vector<128x128xf32>
    %18 = arith.addf %15, %17 : vector<128x128xf32>
    %cst_15 = arith.constant 0.000000e+00 : f32
    %19 = vector.broadcast %cst_15 : f32 to vector<128x128xf32>
    %20 = arith.maximumf %18, %19 : vector<128x128xf32>
    %21 = arith.truncf %20 : vector<128x128xf32> to vector<128x128xbf16>
    %c0_16 = arith.constant 0 : index
    %c0_17 = arith.constant 0 : index
    %22 = vector.load %arg6[%c0_16, %c0_17] : memref<128x128xbf16, #tpu.memory_space<vmem>>, vector<128x128xbf16>
    %cst_18 = arith.constant dense<0.000000e+00> : vector<128x128xf32>
    %23 = tpu.matmul %21, %22, %cst_18 {dimension_numbers = #tpu.dot_dimension_numbers<[1], [0], [0], [1], [0, 0, 1, 1], [], []>} : vector<128x128xbf16>, vector<128x128xbf16>, vector<128x128xf32> -> vector<128x128xf32>
    %c0_19 = arith.constant 0 : index
    %c0_20 = arith.constant 0 : index
    %24 = vector.load %arg7[%c0_19, %c0_20] : memref<1x128xf32, #tpu.memory_space<vmem>>, vector<1x128xf32>
    %25 = vector.broadcast %24 : vector<1x128xf32> to vector<128x128xf32>
    %26 = arith.addf %23, %25 : vector<128x128xf32>
    %c0_21 = arith.constant 0 : index
    %c0_22 = arith.constant 0 : index
    %27 = vector.load %arg8[%c0_21, %c0_22] : memref<128x128xf32, #tpu.memory_space<vmem>>, vector<128x128xf32>
    tpu.vector_store %arg8[%c0_21, %c0_22], %26 {strides = array<i32>} : memref<128x128xf32, #tpu.memory_space<vmem>>, vector<128x128xf32>,
    return
  }
}

</mosaic_0001>

<bundles_post_ra>
// kernel: _apply_jit.1
= control target key start
LH: loop header
LB: loop body
LE: loop exit
PB: predicated region body
PF: predicated region fallthrough
CT: control target
= control target key end

     0   :  { %13 = vsyncpa [#allocation3], 0  ;;  %s1587_s0 = inlined_call_operand.vmem [shape: bf16[128,128], index: 0, kind: input, shape index: {}]   ;;  %s1588_s1 = inlined_call_operand.vmem [shape: bf16[128,128], index: 1, kind: input, shape index: {}]   ;;  %s1589_s2 = inlined_call_operand.hbm [shape: bf16[128,128], index: 2, kind: input, shape index: {}]   ;;  %s1590_s3 = inlined_call_operand.vmem [shape: f32[1,128], index: 3, kind: input, shape index: {}]   ;;  %s1591_s4 = inlined_call_operand.hbm [shape: bf16[128,128], index: 4, kind: input, shape index: {}]   ;;  %s1592_s5 = inlined_call_operand.vmem [shape: f32[1,128], index: 5, kind: input, shape index: {}]   ;;  %s1593_s6 = inlined_call_operand.hbm [shape: bf16[128,128], index: 6, kind: input, shape index: {}]   ;;  %s1594_s7 = inlined_call_operand.vmem [shape: f32[1,128], index: 7, kind: input, shape index: {}]   ;;  %s1595_s8 = inlined_call_operand.vmem [shape: f32[128,128], index: 8, kind: output, shape index: {}]  }
   0x1   :  { %14 = vsyncpa [#allocation5], 0  ;;  %s1391_s27 = smov [#allocation4]   ;;  %s1392_s29 = smov [#allocation2]  }
   0x2   :  { %s38_s28 = sshll.u32 %s1391_s27, 4  ;;  %s24_s30 = sshll.u32 %s1392_s29, 4  ;;  %s39_s28 = int_to_ptr.vmem [resolvable:$true] %s38_s28  ;;  %s25_s30 = int_to_ptr.vmem [resolvable:$true] %s24_s30 }
   0x3   :  { %s1335_s9 = scalar_lea.vmem %s39_s28, 1024  ;;  %p1340_p1 = scmp.lt.s32.totalorder %s39_s28, %s39_s28 }
   0x4   :  { %p1336_p0 = scmp.ne.s32.totalorder %s39_s28, %s1335_s9  ;;  %p1341_p2 = scmp.lt.s32.totalorder %s1335_s9, %s1335_s9 }
   0x6   :  { %p1342_p3 = por %p1341_p2, %p1340_p1 }
   0x8   :  { %p1343_p4 = pnand %p1342_p3, %p1336_p0 }
   0xa   :  { %1346 = shalt.err (!%p1343_p4)
}
   0xb   :  { %s1393_s10 = smov 64   ;;  %s1394_s11 = smov 4  }
   0xc   :  { %44 = dma.hbm_to_vmem [thread:$0]  %s1591_s4, 1024, %s39_s28, [#allocation5], %s1393_s10, %s1393_s10, %s1394_s11  }
   0xd   :  { %s1355_s14 = scalar_lea.vmem %s25_s30, 1024  ;;  %p1360_p6 = scmp.lt.s32.totalorder %s25_s30, %s25_s30 }
   0xe   :  { %p1356_p5 = scmp.ne.s32.totalorder %s25_s30, %s1355_s14  ;;  %p1361_p7 = scmp.lt.s32.totalorder %s1355_s14, %s1355_s14 }
  0x10   :  { %p1362_p8 = por %p1361_p7, %p1360_p6 }
  0x12   :  { %p1363_p9 = pnand %p1362_p8, %p1356_p5 }
  0x14   :  { %1366 = shalt.err (!%p1363_p9)
}
  0x15   :  { %30 = dma.hbm_to_vmem [thread:$0]  %s1589_s2, 1024, %s25_s30, [#allocation3], %s1393_s10, %s1393_s10, %s1394_s11  }
  0x16   :  { %s1395_s17 = smov [#allocation6]  }
  0x17   :  { %s52_s18 = sshll.u32 %s1395_s17, 4  ;;  %s53_s18 = int_to_ptr.vmem [resolvable:$true] %s52_s18 }
  0x18   :  { %s1375_s19 = scalar_lea.vmem %s53_s18, 1024  ;;  %p1380_p11 = scmp.lt.s32.totalorder %s53_s18, %s53_s18 }
  0x19   :  { %p1376_p10 = scmp.ne.s32.totalorder %s53_s18, %s1375_s19  ;;  %p1381_p12 = scmp.lt.s32.totalorder %s1375_s19, %s1375_s19 }
  0x1b   :  { %p1382_p13 = por %p1381_p12, %p1380_p11 }
  0x1d   :  { %p1383_p0 = pnand %p1382_p13, %p1376_p10 }
  0x1f   :  { %1386 = shalt.err (!%p1383_p0)
}
  0x20   :  { %58 = dma.hbm_to_vmem [thread:$0]  %s1593_s6, 1024, %s53_s18, [#allocation5], %s1393_s10, %s1393_s10, %s1394_s11  }
  0x21   :  { %1387 = dma.done.wait [#allocation3], 1024  }
  0x22   :  { %1388 = vsyncadd [#allocation3], 4294966272 }
  0x23   :  { %1389 = dma.done.wait [#allocation5], 2048  }
  0x24   :  { %1390 = vsyncadd [#allocation5], 4294965248  ;;  %v1287_v0 = vld [vmem:[#allocation2 + $0x38] sm:$0xff]   ;;  %v1288_v1 = vld [vmem:[#allocation2 + $0x30] sm:$0xff]  }
  0x25   :  { %1106 = vmatprep.subr.bf16.mxu0 %v1287_v0  ;;  %v1289_v2 = vld [vmem:[#allocation2 + $0x28] sm:$0xff]   ;;  %v1290_v3 = vld [vmem:[#allocation2 + $0x20] sm:$0xff]   ;;  %v1291_v5 = vld [vmem:[#allocation2 + $0x18] sm:$0xff]  }
  0x26   :  { %1107 = vmatpush3.bf16.msra.mxu0 %v1287_v0  ;;  %v1295_v4 = vld [vmem:[%s1588_s1] sm:$0xff]   ;;  %v1292_v6 = vld [vmem:[#allocation2 + $0x10] sm:$0xff]   ;;  %v1293_v7 = vld [vmem:[#allocation2 + $0x8] sm:$0xff]  }
  0x27   :  { %1108 = vmatprep.subr.bf16.mxu0 %v1288_v1  ;;  %1122 = vmatprep.mubr.bf16.mxu0 %v1295_v4  ;;  %v1294_v8 = vld [vmem:[#allocation2] sm:$0xff]   ;;  %v1296_v9 = vld [vmem:[%s1588_s1 + $0x8] sm:$0xff]   ;;  %v1297_v10 = vld [vmem:[%s1588_s1 + $0x10] sm:$0xff]  }
  0x28   :  { %v1298_v11 = vld [vmem:[%s1588_s1 + $0x18] sm:$0xff]   ;;  %v1299_v12 = vld [vmem:[%s1588_s1 + $0x20] sm:$0xff]   ;;  %v1300_v13 = vld [vmem:[%s1588_s1 + $0x28] sm:$0xff]  }
  0x29   :  { %v1301_v14 = vld [vmem:[%s1588_s1 + $0x30] sm:$0xff]   ;;  %v1302_v15 = vld [vmem:[%s1588_s1 + $0x38] sm:$0xff]   ;;  %v1477_v16 = vld [vmem:[%s1587_s0] sm:$0xff]  }
  0x2a   :  { %1109 = vmatpush3.bf16.msra.mxu0 %v1288_v1  ;;  %1154 = vmatprep.mubr.bf16.mxu1 %v1477_v16  ;;  %v1311_v17 = vld [vmem:[#allocation4 + $0x38] sm:$0xff]   ;;  %v1312_v18 = vld [vmem:[#allocation4 + $0x30] sm:$0xff]   ;;  %v1313_v19 = vld [vmem:[#allocation4 + $0x28] sm:$0xff]  }
  0x2b   :  { %1110 = vmatprep.subr.bf16.mxu0 %v1289_v2  ;;  %v1314_v20 = vld [vmem:[#allocation4 + $0x20] sm:$0xff]   ;;  %v1315_v21 = vld [vmem:[#allocation4 + $0x18] sm:$0xff]   ;;  %v1483_v46 = vld [vmem:[%s1587_s0 + $0x8] sm:$0xff]  }
  0x2c   :  { %v1488_v47 = vld [vmem:[%s1587_s0 + $0x10] sm:$0xff]   ;;  %v1495_v48 = vld [vmem:[%s1587_s0 + $0x18] sm:$0xff]   ;;  %v1500_v49 = vld [vmem:[%s1587_s0 + $0x20] sm:$0xff]  }
  0x2d   :  { %v1507_v50 = vld [vmem:[%s1587_s0 + $0x28] sm:$0xff]   ;;  %v1512_v51 = vld [vmem:[%s1587_s0 + $0x30] sm:$0xff]   ;;  %v1519_v52 = vld [vmem:[%s1587_s0 + $0x38] sm:$0xff]  }
  0x2e   :  { %1111 = vmatpush3.bf16.msra.mxu0 %v1289_v2  ;;  %v1316_v53 = vld [vmem:[#allocation4 + $0x10] sm:$0xff]   ;;  %v1317_v54 = vld [vmem:[#allocation4 + $0x8] sm:$0xff]   ;;  %v1318_v55 = vld [vmem:[#allocation4] sm:$0xff]  }
  0x2f   :  { %1112 = vmatprep.subr.bf16.mxu0 %v1290_v3  ;;  %v999_v58 = vld [vmem:[%s1590_s3] ss:$0 sm:$0xff] }
  0x32   :  { %1113 = vmatpush3.bf16.msra.mxu0 %v1290_v3 }
  0x33   :  { %1114 = vmatprep.subr.bf16.mxu0 %v1291_v5 }
  0x36   :  { %1115 = vmatpush3.bf16.msra.mxu0 %v1291_v5 }
  0x37   :  { %1116 = vmatprep.subr.bf16.mxu0 %v1292_v6 }
  0x3a   :  { %1117 = vmatpush3.bf16.msra.mxu0 %v1292_v6 }
  0x3b   :  { %1118 = vmatprep.subr.bf16.mxu0 %v1293_v7 }
  0x3e   :  { %1119 = vmatpush3.bf16.msra.mxu0 %v1293_v7 }
  0x3f   :  { %1120 = vmatprep.subr.bf16.mxu0 %v1294_v8 }
  0x42   :  { %1121 = vmatpush3.bf16.msra.mxu0 %v1294_v8 }
  0x43   :  { %1170 = vmatprep.subr.bf16.mxu0 %v1311_v17 }
  0x45   :  { %1123 = vmatmul.mubr.bf16.vlgmr.msra.gmra.mxu0 %v1296_v9 }
  0x46   :  { %1126 = vmatprep.mubr.bf16.mxu0 %v1297_v10  ;;  %1171 = vmatpush3.bf16.msra.mxu0 %v1311_v17 }
  0x47   :  { %1172 = vmatprep.subr.bf16.mxu0 %v1312_v18 }
  0x4a   :  { %1173 = vmatpush3.bf16.msra.mxu0 %v1312_v18 }
  0x4b   :  { %1174 = vmatprep.subr.bf16.mxu0 %v1313_v19 }
  0x4d   :  { %1127 = vmatmul.mubr.bf16.gmra.mxu0 %v1298_v11 }
  0x4e   :  { %1130 = vmatprep.mubr.bf16.mxu0 %v1299_v12  ;;  %1175 = vmatpush3.bf16.msra.mxu0 %v1313_v19 }
  0x4f   :  { %1176 = vmatprep.subr.bf16.mxu0 %v1314_v20 }
  0x52   :  { %1177 = vmatpush3.bf16.msra.mxu0 %v1314_v20 }
  0x53   :  { %1178 = vmatprep.subr.bf16.mxu0 %v1315_v21 }
  0x55   :  { %1131 = vmatmul.mubr.bf16.gmra.mxu0 %v1300_v13 }
  0x56   :  { %1134 = vmatprep.mubr.bf16.mxu0 %v1301_v14  ;;  %1179 = vmatpush3.bf16.msra.mxu0 %v1315_v21 }
  0x57   :  { %1180 = vmatprep.subr.bf16.mxu0 %v1316_v53 }
  0x5a   :  { %1181 = vmatpush3.bf16.msra.mxu0 %v1316_v53 }
  0x5b   :  { %1182 = vmatprep.subr.bf16.mxu0 %v1317_v54 }
  0x5d   :  { %1135 = vmatmul.mubr.bf16.gmra.mxu0 %v1302_v15 }
  0x5e   :  { %1183 = vmatpush3.bf16.msra.mxu0 %v1317_v54 }
  0x5f   :  { %1184 = vmatprep.subr.bf16.mxu0 %v1318_v55 }
  0x62   :  { %1185 = vmatpush3.bf16.msra.mxu0 %v1318_v55 }
 0x105   :  { %v1124_v22 = vpop.f32.mrf.mxu0 }
 0x107   :  { %v249_v23 = vpop.f32.mrf.mxu0 }
 0x109   :  { %v1125_v24 = vpop.f32.mrf.mxu0 }
 0x10a   :  { %v313_v44 = vpack.c.bf16 %v1125_v24, %v1124_v22 }
 0x10b   :  { %v252_v25 = vpop.f32.mrf.mxu0 }
 0x10c   :  { %v312_v45 = vpack.c.bf16 %v252_v25, %v249_v23 }
 0x10d   :  { %v1128_v26 = vpop.f32.mrf.mxu0 }
 0x10f   :  { %v265_v27 = vpop.f32.mrf.mxu0 }
 0x111   :  { %v1129_v28 = vpop.f32.mrf.mxu0 }
 0x112   :  { %v315_v42 = vpack.c.bf16 %v1129_v28, %v1128_v26 }
 0x113   :  { %v268_v29 = vpop.f32.mrf.mxu0 }
 0x114   :  { %v314_v43 = vpack.c.bf16 %v268_v29, %v265_v27 }
 0x115   :  { %v1132_v30 = vpop.f32.mrf.mxu0 }
 0x117   :  { %v281_v31 = vpop.f32.mrf.mxu0 }
 0x119   :  { %v1133_v32 = vpop.f32.mrf.mxu0 }
 0x11a   :  { %v317_v40 = vpack.c.bf16 %v1133_v32, %v1132_v30 }
 0x11b   :  { %v284_v33 = vpop.f32.mrf.mxu0 }
 0x11c   :  { %v316_v41 = vpack.c.bf16 %v284_v33, %v281_v31 }
 0x11d   :  { %v1136_v34 = vpop.f32.mrf.mxu0 }
 0x11f   :  { %v297_v35 = vpop.f32.mrf.mxu0 }
 0x121   :  { %v1137_v36 = vpop.f32.mrf.mxu0 }
 0x122   :  { %v319_v37 = vpack.c.bf16 %v1137_v36, %v1136_v34 }
 0x123   :  { %v300_v38 = vpop.f32.mrf.mxu0 }
 0x124   :  { %v318_v39 = vpack.c.bf16 %v300_v38, %v297_v35  ;;  %1138 = vmatprep.subr.bf16.mxu1 %v319_v37 }
 0x125   :  { %1139 = vmatpush3.bf16.msra.mxu1 %v319_v37 }
 0x126   :  { %1140 = vmatprep.subr.bf16.mxu1 %v318_v39 }
 0x129   :  { %1141 = vmatpush3.bf16.msra.mxu1 %v318_v39 }
 0x12a   :  { %1142 = vmatprep.subr.bf16.mxu1 %v317_v40 }
 0x12d   :  { %1143 = vmatpush3.bf16.msra.mxu1 %v317_v40 }
 0x12e   :  { %1144 = vmatprep.subr.bf16.mxu1 %v316_v41 }
 0x131   :  { %1145 = vmatpush3.bf16.msra.mxu1 %v316_v41 }
 0x132   :  { %1146 = vmatprep.subr.bf16.mxu1 %v315_v42 }
 0x135   :  { %1147 = vmatpush3.bf16.msra.mxu1 %v315_v42 }
 0x136   :  { %1148 = vmatprep.subr.bf16.mxu1 %v314_v43 }
 0x139   :  { %1149 = vmatpush3.bf16.msra.mxu1 %v314_v43 }
 0x13a   :  { %1150 = vmatprep.subr.bf16.mxu1 %v313_v44 }
 0x13d   :  { %1151 = vmatpush3.bf16.msra.mxu1 %v313_v44 }
 0x13e   :  { %1152 = vmatprep.subr.bf16.mxu1 %v312_v45 }
 0x141   :  { %1153 = vmatpush3.bf16.msra.mxu1 %v312_v45 }
 0x144   :  { %1155 = vmatmul.mubr.bf16.vlgmr.msra.gmra.mxu1 %v1483_v46 }
 0x145   :  { %1158 = vmatprep.mubr.bf16.mxu1 %v1488_v47 }
 0x14c   :  { %1159 = vmatmul.mubr.bf16.gmra.mxu1 %v1495_v48 }
 0x14d   :  { %1162 = vmatprep.mubr.bf16.mxu1 %v1500_v49 }
 0x154   :  { %1163 = vmatmul.mubr.bf16.gmra.mxu1 %v1507_v50 }
 0x155   :  { %1166 = vmatprep.mubr.bf16.mxu1 %v1512_v51 }
 0x15c   :  { %1167 = vmatmul.mubr.bf16.gmra.mxu1 %v1519_v52 }
 0x15d   :  { %1218 = vmatprep.mubr.bf16.mxu1 %v1477_v16 }
 0x204   :  { %v1156_v56 = vpop.f32.mrf.mxu1 }
 0x205   :  { %v418_v62 = vadd.f32 %v1156_v56, %v999_v58  ;;  %v1319_v56 = vld [vmem:[#allocation6 + $0x38] sm:$0xff]  }
 0x206   :  { %v409_v57 = vpop.f32.mrf.mxu1  ;;  %1234 = vmatprep.subr.bf16.mxu0 %v1319_v56 }
 0x207   :  { %v410_v60 = vadd.f32 %v999_v58, %v409_v57  ;;  %v474_v5 = vmax.f32 %v418_v62, 0.0  ;;  %v1320_v57 = vld [vmem:[#allocation6 + $0x30] sm:$0xff]  }
 0x208   :  { %v1157_v59 = vpop.f32.mrf.mxu1 }
 0x209   :  { %v421_v61 = vadd.f32 %v1157_v59, %v999_v58  ;;  %v472_v3 = vmax.f32 %v410_v60, 0.0  ;;  %v1321_v59 = vld [vmem:[#allocation6 + $0x28] sm:$0xff]   ;;  %v1322_v60 = vld [vmem:[#allocation6 + $0x20] sm:$0xff]  }
 0x20a   :  { %v412_v63 = vpop.f32.mrf.mxu1 }
 0x20b   :  { %v413_v0 = vadd.f32 %v999_v58, %v412_v63  ;;  %v475_v1 = vmax.f32 %v421_v61, 0.0 }
 0x20c   :  { %v1160_v2 = vpop.f32.mrf.mxu1 }
 0x20d   :  { %v473_v4 = vmax.f32 %v413_v0, 0.0  ;;  %v489_v8 = vpack.c.bf16 %v475_v1, %v474_v5  ;;  %v434_v12 = vadd.f32 %v1160_v2, %v999_v58 }
 0x20e   :  { %v425_v6 = vpop.f32.mrf.mxu1 }
 0x20f   :  { %v488_v7 = vpack.c.bf16 %v473_v4, %v472_v3  ;;  %v426_v10 = vadd.f32 %v999_v58, %v425_v6  ;;  %v478_v19 = vmax.f32 %v434_v12, 0.0 }
 0x210   :  { %v1161_v9 = vpop.f32.mrf.mxu1 }
 0x211   :  { %v437_v11 = vadd.f32 %v1161_v9, %v999_v58  ;;  %1186 = vmatprep.mubr.bf16.mxu0 %v488_v7  ;;  %v476_v17 = vmax.f32 %v426_v10, 0.0 }
 0x212   :  { %v428_v13 = vpop.f32.mrf.mxu1  ;;  %1187 = vmatmul.mubr.bf16.vlgmr.msra.gmra.mxu0 %v489_v8 }
 0x213   :  { %v429_v14 = vadd.f32 %v999_v58, %v428_v13  ;;  %v479_v15 = vmax.f32 %v437_v11, 0.0  ;;  %1235 = vmatpush3.bf16.msra.mxu0 %v1319_v56 }
 0x214   :  { %v1164_v16 = vpop.f32.mrf.mxu1  ;;  %1236 = vmatprep.subr.bf16.mxu0 %v1320_v57 }
 0x215   :  { %v477_v18 = vmax.f32 %v429_v14, 0.0  ;;  %v491_v22 = vpack.c.bf16 %v479_v15, %v478_v19  ;;  %v450_v26 = vadd.f32 %v1164_v16, %v999_v58 }
 0x216   :  { %v441_v20 = vpop.f32.mrf.mxu1 }
 0x217   :  { %v490_v21 = vpack.c.bf16 %v477_v18, %v476_v17  ;;  %v442_v24 = vadd.f32 %v999_v58, %v441_v20  ;;  %v482_v33 = vmax.f32 %v450_v26, 0.0  ;;  %1237 = vmatpush3.bf16.msra.mxu0 %v1320_v57 }
 0x218   :  { %v1165_v23 = vpop.f32.mrf.mxu1  ;;  %1238 = vmatprep.subr.bf16.mxu0 %v1321_v59 }
 0x219   :  { %v453_v25 = vadd.f32 %v1165_v23, %v999_v58  ;;  %1190 = vmatprep.mubr.bf16.mxu0 %v490_v21  ;;  %v480_v31 = vmax.f32 %v442_v24, 0.0 }
 0x21a   :  { %v444_v27 = vpop.f32.mrf.mxu1  ;;  %1191 = vmatmul.mubr.bf16.gmra.mxu0 %v491_v22 }
 0x21b   :  { %v445_v28 = vadd.f32 %v999_v58, %v444_v27  ;;  %v483_v29 = vmax.f32 %v453_v25, 0.0  ;;  %1239 = vmatpush3.bf16.msra.mxu0 %v1321_v59 }
 0x21c   :  { %v1168_v30 = vpop.f32.mrf.mxu1  ;;  %1240 = vmatprep.subr.bf16.mxu0 %v1322_v60 }
 0x21d   :  { %v481_v32 = vmax.f32 %v445_v28, 0.0  ;;  %v493_v36 = vpack.c.bf16 %v483_v29, %v482_v33  ;;  %v466_v40 = vadd.f32 %v1168_v30, %v999_v58 }
 0x21e   :  { %v457_v34 = vpop.f32.mrf.mxu1 }
 0x21f   :  { %v492_v35 = vpack.c.bf16 %v481_v32, %v480_v31  ;;  %v458_v38 = vadd.f32 %v999_v58, %v457_v34  ;;  %v486_v53 = vmax.f32 %v466_v40, 0.0  ;;  %1241 = vmatpush3.bf16.msra.mxu0 %v1322_v60 }
 0x220   :  { %v1169_v37 = vpop.f32.mrf.mxu1 }
 0x221   :  { %v469_v39 = vadd.f32 %v1169_v37, %v999_v58  ;;  %1194 = vmatprep.mubr.bf16.mxu0 %v492_v35  ;;  %v484_v44 = vmax.f32 %v458_v38, 0.0 }
 0x222   :  { %v460_v41 = vpop.f32.mrf.mxu1  ;;  %1195 = vmatmul.mubr.bf16.gmra.mxu0 %v493_v36 }
 0x223   :  { %v461_v42 = vadd.f32 %v999_v58, %v460_v41  ;;  %v487_v43 = vmax.f32 %v469_v39, 0.0  ;;  %v1323_v58 = vld [vmem:[#allocation6 + $0x18] sm:$0xff]  }
 0x224   :  { %1242 = vmatprep.subr.bf16.mxu0 %v1323_v58 }
 0x225   :  { %v485_v45 = vmax.f32 %v461_v42, 0.0  ;;  %v495_v55 = vpack.c.bf16 %v487_v43, %v486_v53  ;;  %1243 = vmatpush3.bf16.msra.mxu0 %v1323_v58 }
 0x227   :  { %v494_v54 = vpack.c.bf16 %v485_v45, %v484_v44 }
 0x229   :  { %1198 = vmatprep.mubr.bf16.mxu0 %v494_v54 }
 0x22a   :  { %1199 = vmatmul.mubr.bf16.gmra.mxu0 %v495_v55 }
 0x2d2   :  { %v1188_v61 = vpop.f32.mrf.mxu0 }
 0x2d4   :  { %v594_v62 = vpop.f32.mrf.mxu0 }
 0x2d6   :  { %v1189_v63 = vpop.f32.mrf.mxu0 }
 0x2d7   :  { %v658_v19 = vpack.c.bf16 %v1189_v63, %v1188_v61 }
 0x2d8   :  { %v597_v0 = vpop.f32.mrf.mxu0 }
 0x2d9   :  { %v657_v20 = vpack.c.bf16 %v597_v0, %v594_v62 }
 0x2da   :  { %v1192_v1 = vpop.f32.mrf.mxu0 }
 0x2dc   :  { %v610_v2 = vpop.f32.mrf.mxu0 }
 0x2de   :  { %v1193_v3 = vpop.f32.mrf.mxu0 }
 0x2df   :  { %v660_v17 = vpack.c.bf16 %v1193_v3, %v1192_v1 }
 0x2e0   :  { %v613_v4 = vpop.f32.mrf.mxu0 }
 0x2e1   :  { %v659_v18 = vpack.c.bf16 %v613_v4, %v610_v2 }
 0x2e2   :  { %v1196_v5 = vpop.f32.mrf.mxu0 }
 0x2e4   :  { %v626_v6 = vpop.f32.mrf.mxu0 }
 0x2e6   :  { %v1197_v7 = vpop.f32.mrf.mxu0 }
 0x2e7   :  { %v662_v15 = vpack.c.bf16 %v1197_v7, %v1196_v5 }
 0x2e8   :  { %v629_v8 = vpop.f32.mrf.mxu0 }
 0x2e9   :  { %v661_v16 = vpack.c.bf16 %v629_v8, %v626_v6 }
 0x2ea   :  { %v1200_v9 = vpop.f32.mrf.mxu0 }
 0x2ec   :  { %v642_v10 = vpop.f32.mrf.mxu0 }
 0x2ee   :  { %v1201_v11 = vpop.f32.mrf.mxu0 }
 0x2ef   :  { %v664_v12 = vpack.c.bf16 %v1201_v11, %v1200_v9 }
 0x2f0   :  { %v645_v13 = vpop.f32.mrf.mxu0 }
 0x2f1   :  { %v663_v14 = vpack.c.bf16 %v645_v13, %v642_v10  ;;  %1202 = vmatprep.subr.bf16.mxu1 %v664_v12 }
 0x2f2   :  { %1203 = vmatpush3.bf16.msra.mxu1 %v664_v12 }
 0x2f3   :  { %1204 = vmatprep.subr.bf16.mxu1 %v663_v14 }
 0x2f6   :  { %1205 = vmatpush3.bf16.msra.mxu1 %v663_v14 }
 0x2f7   :  { %1206 = vmatprep.subr.bf16.mxu1 %v662_v15 }
 0x2fa   :  { %1207 = vmatpush3.bf16.msra.mxu1 %v662_v15 }
 0x2fb   :  { %1208 = vmatprep.subr.bf16.mxu1 %v661_v16 }
 0x2fe   :  { %1209 = vmatpush3.bf16.msra.mxu1 %v661_v16 }
 0x2ff   :  { %1210 = vmatprep.subr.bf16.mxu1 %v660_v17 }
 0x302   :  { %1211 = vmatpush3.bf16.msra.mxu1 %v660_v17  ;;  %v1017_v17 = vld [vmem:[%s1594_s7] ss:$0 sm:$0xff] }
 0x303   :  { %1212 = vmatprep.subr.bf16.mxu1 %v659_v18 }
 0x306   :  { %1213 = vmatpush3.bf16.msra.mxu1 %v659_v18 }
 0x307   :  { %1214 = vmatprep.subr.bf16.mxu1 %v658_v19 }
 0x30a   :  { %1215 = vmatpush3.bf16.msra.mxu1 %v658_v19 }
 0x30b   :  { %1216 = vmatprep.subr.bf16.mxu1 %v657_v20 }
 0x30e   :  { %1217 = vmatpush3.bf16.msra.mxu1 %v657_v20 }
 0x30f   :  { %1266 = vmatprep.subr.bf16.mxu1 %v1319_v56 }
 0x311   :  { %1219 = vmatmul.mubr.bf16.vlgmr.msra.gmra.mxu1 %v1483_v46  ;;  %v1324_v46 = vld [vmem:[#allocation6 + $0x10] sm:$0xff]  }
 0x312   :  { %1222 = vmatprep.mubr.bf16.mxu1 %v1488_v47  ;;  %1274 = vmatpush3.bf16.msra.mxu1 %v1319_v56  ;;  %v1325_v47 = vld [vmem:[#allocation6 + $0x8] sm:$0xff]  }
 0x313   :  { %1267 = vmatprep.subr.bf16.mxu1 %v1320_v57  ;;  %1244 = vmatprep.subr.bf16.mxu0 %v1324_v46 }
 0x314   :  { %1245 = vmatpush3.bf16.msra.mxu0 %v1324_v46 }
 0x315   :  { %1246 = vmatprep.subr.bf16.mxu0 %v1325_v47 }
 0x316   :  { %1275 = vmatpush3.bf16.msra.mxu1 %v1320_v57 }
 0x317   :  { %1268 = vmatprep.subr.bf16.mxu1 %v1321_v59 }
 0x318   :  { %1247 = vmatpush3.bf16.msra.mxu0 %v1325_v47 }
 0x319   :  { %1223 = vmatmul.mubr.bf16.gmra.mxu1 %v1495_v48  ;;  %v1326_v48 = vld [vmem:[#allocation6] sm:$0xff]  }
 0x31a   :  { %1226 = vmatprep.mubr.bf16.mxu1 %v1500_v49  ;;  %1276 = vmatpush3.bf16.msra.mxu1 %v1321_v59 }
 0x31b   :  { %1269 = vmatprep.subr.bf16.mxu1 %v1322_v60  ;;  %1248 = vmatprep.subr.bf16.mxu0 %v1326_v48 }
 0x31c   :  { %1249 = vmatpush3.bf16.msra.mxu0 %v1326_v48 }
 0x31e   :  { %1277 = vmatpush3.bf16.msra.mxu1 %v1322_v60 }
 0x31f   :  { %1270 = vmatprep.subr.bf16.mxu1 %v1323_v58 }
 0x321   :  { %1227 = vmatmul.mubr.bf16.gmra.mxu1 %v1507_v50 }
 0x322   :  { %1230 = vmatprep.mubr.bf16.mxu1 %v1512_v51  ;;  %1278 = vmatpush3.bf16.msra.mxu1 %v1323_v58  ;;  %v1016_v51 = vld [vmem:[%s1592_s5] ss:$0 sm:$0xff] }
 0x323   :  { %1271 = vmatprep.subr.bf16.mxu1 %v1324_v46 }
 0x326   :  { %1279 = vmatpush3.bf16.msra.mxu1 %v1324_v46 }
 0x327   :  { %1272 = vmatprep.subr.bf16.mxu1 %v1325_v47 }
 0x329   :  { %1231 = vmatmul.mubr.bf16.gmra.mxu1 %v1519_v52 }
 0x32a   :  { %1280 = vmatpush3.bf16.msra.mxu1 %v1325_v47 }
 0x32b   :  { %1273 = vmatprep.subr.bf16.mxu1 %v1326_v48 }
 0x32e   :  { %1281 = vmatpush3.bf16.msra.mxu1 %v1326_v48 }
 0x3d1   :  { %v1220_v49 = vpop.f32.mrf.mxu1 }
 0x3d2   :  { %v715_v23 = vadd.f32 %v1220_v49, %v1016_v51 }
 0x3d3   :  { %v706_v50 = vpop.f32.mrf.mxu1 }
 0x3d4   :  { %v707_v21 = vadd.f32 %v1016_v51, %v706_v50  ;;  %v771_v30 = vmax.f32 %v715_v23, 0.0 }
 0x3d5   :  { %v1221_v52 = vpop.f32.mrf.mxu1 }
 0x3d6   :  { %v718_v22 = vadd.f32 %v1221_v52, %v1016_v51  ;;  %v769_v28 = vmax.f32 %v707_v21, 0.0 }
 0x3d7   :  { %v709_v24 = vpop.f32.mrf.mxu1 }
 0x3d8   :  { %v710_v25 = vadd.f32 %v1016_v51, %v709_v24  ;;  %v772_v26 = vmax.f32 %v718_v22, 0.0 }
 0x3d9   :  { %v1224_v27 = vpop.f32.mrf.mxu1 }
 0x3da   :  { %v770_v29 = vmax.f32 %v710_v25, 0.0  ;;  %v786_v33 = vpack.c.bf16 %v772_v26, %v771_v30  ;;  %v731_v37 = vadd.f32 %v1224_v27, %v1016_v51 }
 0x3db   :  { %v722_v31 = vpop.f32.mrf.mxu1 }
 0x3dc   :  { %v785_v32 = vpack.c.bf16 %v770_v29, %v769_v28  ;;  %v723_v35 = vadd.f32 %v1016_v51, %v722_v31  ;;  %v775_v44 = vmax.f32 %v731_v37, 0.0 }
 0x3dd   :  { %v1225_v34 = vpop.f32.mrf.mxu1 }
 0x3de   :  { %v734_v36 = vadd.f32 %v1225_v34, %v1016_v51  ;;  %1250 = vmatprep.mubr.bf16.mxu0 %v785_v32  ;;  %v773_v42 = vmax.f32 %v723_v35, 0.0 }
 0x3df   :  { %v725_v38 = vpop.f32.mrf.mxu1  ;;  %1251 = vmatmul.mubr.bf16.vlgmr.msra.gmra.mxu0 %v786_v33 }
 0x3e0   :  { %v726_v39 = vadd.f32 %v1016_v51, %v725_v38  ;;  %v776_v40 = vmax.f32 %v734_v36, 0.0 }
 0x3e1   :  { %v1228_v41 = vpop.f32.mrf.mxu1 }
 0x3e2   :  { %v774_v43 = vmax.f32 %v726_v39, 0.0  ;;  %v788_v54 = vpack.c.bf16 %v776_v40, %v775_v44  ;;  %v747_v59 = vadd.f32 %v1228_v41, %v1016_v51 }
 0x3e3   :  { %v738_v45 = vpop.f32.mrf.mxu1 }
 0x3e4   :  { %v787_v53 = vpack.c.bf16 %v774_v43, %v773_v42  ;;  %v739_v56 = vadd.f32 %v1016_v51, %v738_v45  ;;  %v779_v1 = vmax.f32 %v747_v59, 0.0 }
 0x3e5   :  { %v1229_v55 = vpop.f32.mrf.mxu1 }
 0x3e6   :  { %v750_v57 = vadd.f32 %v1229_v55, %v1016_v51  ;;  %1254 = vmatprep.mubr.bf16.mxu0 %v787_v53  ;;  %v777_v63 = vmax.f32 %v739_v56, 0.0 }
 0x3e7   :  { %v741_v60 = vpop.f32.mrf.mxu1  ;;  %1255 = vmatmul.mubr.bf16.gmra.mxu0 %v788_v54 }
 0x3e8   :  { %v742_v58 = vadd.f32 %v1016_v51, %v741_v60  ;;  %v780_v61 = vmax.f32 %v750_v57, 0.0 }
 0x3e9   :  { %v1232_v62 = vpop.f32.mrf.mxu1 }
 0x3ea   :  { %v778_v0 = vmax.f32 %v742_v58, 0.0  ;;  %v790_v4 = vpack.c.bf16 %v780_v61, %v779_v1  ;;  %v763_v8 = vadd.f32 %v1232_v62, %v1016_v51 }
 0x3eb   :  { %v754_v2 = vpop.f32.mrf.mxu1 }
 0x3ec   :  { %v789_v3 = vpack.c.bf16 %v778_v0, %v777_v63  ;;  %v755_v6 = vadd.f32 %v1016_v51, %v754_v2  ;;  %v783_v14 = vmax.f32 %v763_v8, 0.0 }
 0x3ed   :  { %v1233_v5 = vpop.f32.mrf.mxu1 }
 0x3ee   :  { %v766_v7 = vadd.f32 %v1233_v5, %v1016_v51  ;;  %1258 = vmatprep.mubr.bf16.mxu1 %v789_v3  ;;  %v781_v12 = vmax.f32 %v755_v6, 0.0 }
 0x3ef   :  { %v757_v9 = vpop.f32.mrf.mxu1  ;;  %1259 = vmatmul.mubr.bf16.vlgmr.msra.gmra.mxu1 %v790_v4 }
 0x3f0   :  { %v758_v10 = vadd.f32 %v1016_v51, %v757_v9  ;;  %v784_v11 = vmax.f32 %v766_v7, 0.0 }
 0x3f2   :  { %v782_v13 = vmax.f32 %v758_v10, 0.0  ;;  %v792_v16 = vpack.c.bf16 %v784_v11, %v783_v14 }
 0x3f4   :  { %v791_v15 = vpack.c.bf16 %v782_v13, %v781_v12 }
 0x3f6   :  { %1262 = vmatprep.mubr.bf16.mxu1 %v791_v15 }
 0x3f7   :  { %1263 = vmatmul.mubr.bf16.gmra.mxu1 %v792_v16 }
 0x49f   :  { %v1252_v18 = vpop.f32.mrf.mxu0 }
 0x4a0   :  { %v907_v19 = vadd.f32 %v1252_v18, %v1017_v17 }
 0x4a1   :  { %v898_v20 = vpop.f32.mrf.mxu0 }
 0x4a2   :  { %963 = vst [vmem:[%s1595_s8 + $0x10] sm:$0xff] %v907_v19  ;;  %v899_v46 = vadd.f32 %v1017_v17, %v898_v20 }
 0x4a3   :  { %v1253_v47 = vpop.f32.mrf.mxu0 }
 0x4a4   :  { %961 = vst [vmem:[%s1595_s8] sm:$0xff] %v899_v46  ;;  %v910_v48 = vadd.f32 %v1253_v47, %v1017_v17 }
 0x4a5   :  { %v901_v49 = vpop.f32.mrf.mxu0 }
 0x4a6   :  { %964 = vst [vmem:[%s1595_s8 + $0x18] sm:$0xff] %v910_v48  ;;  %v902_v50 = vadd.f32 %v1017_v17, %v901_v49 }
 0x4a7   :  { %v1256_v51 = vpop.f32.mrf.mxu0 }
 0x4a8   :  { %962 = vst [vmem:[%s1595_s8 + $0x8] sm:$0xff] %v902_v50  ;;  %v923_v52 = vadd.f32 %v1256_v51, %v1017_v17 }
 0x4a9   :  { %v914_v21 = vpop.f32.mrf.mxu0 }
 0x4aa   :  { %967 = vst [vmem:[%s1595_s8 + $0x30] sm:$0xff] %v923_v52  ;;  %v915_v22 = vadd.f32 %v1017_v17, %v914_v21 }
 0x4ab   :  { %v1257_v23 = vpop.f32.mrf.mxu0 }
 0x4ac   :  { %965 = vst [vmem:[%s1595_s8 + $0x20] sm:$0xff] %v915_v22  ;;  %v926_v24 = vadd.f32 %v1257_v23, %v1017_v17 }
 0x4ad   :  { %v917_v25 = vpop.f32.mrf.mxu0 }
 0x4ae   :  { %968 = vst [vmem:[%s1595_s8 + $0x38] sm:$0xff] %v926_v24  ;;  %v918_v26 = vadd.f32 %v1017_v17, %v917_v25 }
 0x4af   :  { %v1260_v27 = vpop.f32.mrf.mxu1 }
 0x4b0   :  { %966 = vst [vmem:[%s1595_s8 + $0x28] sm:$0xff] %v918_v26  ;;  %v939_v28 = vadd.f32 %v1260_v27, %v1017_v17 }
 0x4b1   :  { %v930_v29 = vpop.f32.mrf.mxu1 }
 0x4b2   :  { %971 = vst [vmem:[%s1595_s8 + $0x50] sm:$0xff] %v939_v28  ;;  %v931_v30 = vadd.f32 %v1017_v17, %v930_v29 }
 0x4b3   :  { %v1261_v31 = vpop.f32.mrf.mxu1 }
 0x4b4   :  { %969 = vst [vmem:[%s1595_s8 + $0x40] sm:$0xff] %v931_v30  ;;  %v942_v32 = vadd.f32 %v1261_v31, %v1017_v17 }
 0x4b5   :  { %v933_v33 = vpop.f32.mrf.mxu1 }
 0x4b6   :  { %972 = vst [vmem:[%s1595_s8 + $0x58] sm:$0xff] %v942_v32  ;;  %v934_v34 = vadd.f32 %v1017_v17, %v933_v33 }
 0x4b7   :  { %v1264_v35 = vpop.f32.mrf.mxu1 }
 0x4b8   :  { %970 = vst [vmem:[%s1595_s8 + $0x48] sm:$0xff] %v934_v34  ;;  %v955_v36 = vadd.f32 %v1264_v35, %v1017_v17 }
 0x4b9   :  { %v946_v37 = vpop.f32.mrf.mxu1 }
 0x4ba   :  { %975 = vst [vmem:[%s1595_s8 + $0x70] sm:$0xff] %v955_v36  ;;  %v947_v38 = vadd.f32 %v1017_v17, %v946_v37 }
 0x4bb   :  { %v1265_v39 = vpop.f32.mrf.mxu1 }
 0x4bc   :  { %973 = vst [vmem:[%s1595_s8 + $0x60] sm:$0xff] %v947_v38  ;;  %v958_v40 = vadd.f32 %v1265_v39, %v1017_v17 }
 0x4bd   :  { %v949_v41 = vpop.f32.mrf.mxu1 }
 0x4be   :  { %976 = vst [vmem:[%s1595_s8 + $0x78] sm:$0xff] %v958_v40  ;;  %v950_v42 = vadd.f32 %v1017_v17, %v949_v41 }
 0x4c0   :  { %974 = vst [vmem:[%s1595_s8 + $0x68] sm:$0xff] %v950_v42 }
 0x4c1   :  { %981 = vsyncpa [#allocation3], 1 }
 0x4c2   :  { %982 = vsyncpa [#allocation5], 1 }

</bundles_post_ra>
